<compile_context>
chip_gen: v6e
topology: v6e:2x2x1
jax: 0.10.0
libtpu: 0.0.40
codegen_flags: <defaults>
</compile_context>

<pallas_src>
import numpy as np
import jax
import jax.numpy as jnp
from jax.experimental import pallas as pl
from jax.experimental.pallas import tpu as pltpu


# ---------------------------------------------------------------------------
# Fused Pallas kernels (one launch per head / aux layer)
# ---------------------------------------------------------------------------

def _bbox_head_kernel(scal_ref, boxes_ref, mask_ref, pred_ref, pred_t_ref,
                      logits_ref, gt_ref, out_ref):
    """Fused bbox-head losses.

    scal_ref  : SMEM [1,1]  -> 1 / num_boxes
    boxes_ref : VMEM [8,Mp] -> rows 0:4 matched src boxes (cx,cy,w,h, lane-dense pairs),
                               rows 4:8 matched tgt boxes
    mask_ref  : VMEM [1,Mp] -> 1.0 for real matched pairs, 0.0 for lane padding
    pred_ref  : VMEM [B,Q,4], pred_t_ref : VMEM [B,4,Q]  (same data, both layouts)
    logits_ref: VMEM [B,Q]  pred_*_prob logits,  gt_ref : VMEM [B,Q] 0/1 soft targets
    out_ref   : SMEM [1,4]  -> [loss_bbox, loss_giou, loss_overlap, loss_prob]
    """
    inv_num = scal_ref[0, 0]
    boxes = boxes_ref[...]
    src = boxes[0:4, :]
    tgt = boxes[4:8, :]
    msk = mask_ref[...] * inv_num               # fold 1/num_boxes into the mask

    # --- L1 over matched pairs ------------------------------------------------
    out_ref[0, 0] = jnp.sum(jnp.abs(src - tgt) * msk)

    # --- GIoU over matched pairs (coords on sublane rows, pairs on lanes) ------
    def xyxy(b):
        cx, cy, w, h = b[0:1, :], b[1:2, :], b[2:3, :], b[3:4, :]
        return cx - 0.5 * w, cy - 0.5 * h, cx + 0.5 * w, cy + 0.5 * h

    sx0, sy0, sx1, sy1 = xyxy(src)
    tx0, ty0, tx1, ty1 = xyxy(tgt)
    area_s = (sx1 - sx0) * (sy1 - sy0)
    area_t = (tx1 - tx0) * (ty1 - ty0)
    iw = jnp.maximum(jnp.minimum(sx1, tx1) - jnp.maximum(sx0, tx0), 0.0)
    ih = jnp.maximum(jnp.minimum(sy1, ty1) - jnp.maximum(sy0, ty0), 0.0)
    inter = iw * ih
    union = area_s + area_t - inter
    iou = inter * pl.reciprocal(jnp.maximum(union, 1e-7), approx=True)
    cw = jnp.maximum(sx1, tx1) - jnp.minimum(sx0, tx0)
    ch = jnp.maximum(sy1, ty1) - jnp.minimum(sy0, ty0)
    area_c = jnp.maximum(cw * ch, 1e-7)
    giou = iou - (area_c - union) * pl.reciprocal(area_c, approx=True)
    out_ref[0, 1] = jnp.sum((1.0 - giou) * msk)

    # --- Overlap penalty: mean off-diagonal pairwise IoU of all predictions ----
    # TODO(synk): boxOps.overlap_ll source is not provided; implemented as the mean
    # off-diagonal pairwise IoU of the predicted boxes (overlap penalty).
    # TODO(synk): for DETR-scale Q (300-900) tile this over a QxQ grid with a
    # "parallel" axis (v7x: 64 MiB VMEM / 2 TensorCores) instead of one shot.
    p = pred_ref[...].astype(jnp.float32)        # [B, Q, 4]
    pt = pred_t_ref[...].astype(jnp.float32)     # [B, 4, Q]
    B, Q, _ = p.shape

    def xyxy_cols(b):                            # -> [B, Q, 1]
        cx, cy, w, h = b[:, :, 0:1], b[:, :, 1:2], b[:, :, 2:3], b[:, :, 3:4]
        return cx - 0.5 * w, cy - 0.5 * h, cx + 0.5 * w, cy + 0.5 * h

    def xyxy_rows(bt):                           # -> [B, 1, Q]
        cx, cy, w, h = bt[:, 0:1, :], bt[:, 1:2, :], bt[:, 2:3, :], bt[:, 3:4, :]
        return cx - 0.5 * w, cy - 0.5 * h, cx + 0.5 * w, cy + 0.5 * h

    ax0, ay0, ax1, ay1 = xyxy_cols(p)
    bx0, by0, bx1, by1 = xyxy_rows(pt)
    iwp = jnp.maximum(jnp.minimum(ax1, bx1) - jnp.maximum(ax0, bx0), 0.0)   # [B,Q,Q]
    ihp = jnp.maximum(jnp.minimum(ay1, by1) - jnp.maximum(ay0, by0), 0.0)
    inter_p = iwp * ihp
    area_a = (ax1 - ax0) * (ay1 - ay0)
    area_b = (bx1 - bx0) * (by1 - by0)
    union_p = area_a + area_b - inter_p
    iou_p = inter_p * pl.reciprocal(jnp.maximum(union_p, 1e-7), approx=True)
    # Off-diagonal sum = total - diagonal; the diagonal (self-IoU) is computed from
    # [B,1,Q] vectors with the exact same arithmetic as the (i,i) entries of iou_p,
    # so degenerate (near-zero-area) boxes cancel exactly.
    dw = jnp.maximum(bx1 - bx0, 0.0)
    dh = jnp.maximum(by1 - by0, 0.0)
    inter_d = dw * dh
    area_d = (bx1 - bx0) * (by1 - by0)
    union_d = area_d + area_d - inter_d
    diag = inter_d * pl.reciprocal(jnp.maximum(union_d, 1e-7), approx=True)
    inv_cnt = 1.0 / float(max(B * Q * (Q - 1), 1))        # Q == 1 guard
    out_ref[0, 2] = jnp.sum(iou_p * inv_cnt) - jnp.sum(diag * inv_cnt)

    # --- Soft-label cross entropy; FocalLoss(gamma=0): (1-e^{-ce})^0 * ce == ce --
    x = logits_ref[...].astype(jnp.float32)      # [B, Q]
    t = gt_ref[...]
    mx = jnp.max(x, axis=-1, keepdims=True)
    z = x - mx
    lse = jnp.log(jnp.sum(jnp.exp(z), axis=-1, keepdims=True))
    inv_b = 1.0 / float(x.shape[0])
    out_ref[0, 3] = jnp.sum((-t * inv_b) * (z - lse))


def _bezier_head_kernel(scal_ref, pts_ref, mask_ref, logits_ref, gt_ref, out_ref):
    """Fused bezier-head losses.

    pts_ref : VMEM [2C, Mp] rows 0:C matched src points, C:2C matched tgt points.
    out_ref : SMEM [1,2] -> [loss_bezier, loss_prob].
    """
    inv_num = scal_ref[0, 0]
    pts = pts_ref[...]
    C = pts.shape[0] // 2
    msk = mask_ref[...] * inv_num
    out_ref[0, 0] = jnp.sum(jnp.abs(pts[0:C, :] - pts[C:2 * C, :]) * msk)

    x = logits_ref[...].astype(jnp.float32)
    t = gt_ref[...]
    mx = jnp.max(x, axis=-1, keepdims=True)
    z = x - mx
    lse = jnp.log(jnp.sum(jnp.exp(z), axis=-1, keepdims=True))
    inv_b = 1.0 / float(x.shape[0])
    out_ref[0, 1] = jnp.sum((-t * inv_b) * (z - lse))    # FocalLoss(gamma=0) == CE


# ---------------------------------------------------------------------------
# pallas_call wrappers (jitted -> traced/compiled once per shape signature)
# ---------------------------------------------------------------------------

_VMEM = pl.BlockSpec(memory_space=pltpu.MemorySpace.VMEM)
_SMEM = pl.BlockSpec(memory_space=pltpu.MemorySpace.SMEM)


@jax.jit
def bbox_head_losses(inv_num, boxes, mask, pred, pred_t, logits, gt):
    out = pl.pallas_call(
        _bbox_head_kernel,
        out_shape=jax.ShapeDtypeStruct((1, 4), jnp.float32),
        in_specs=[_SMEM, _VMEM, _VMEM, _VMEM, _VMEM, _VMEM, _VMEM],
        out_specs=_SMEM,
    )(inv_num, boxes, mask, pred, pred_t, logits, gt)
    return out[0]


@jax.jit
def bezier_head_losses(inv_num, pts, mask, logits, gt):
    out = pl.pallas_call(
        _bezier_head_kernel,
        out_shape=jax.ShapeDtypeStruct((1, 2), jnp.float32),
        in_specs=[_SMEM, _VMEM, _VMEM, _VMEM, _VMEM],
        out_specs=_SMEM,
    )(inv_num, pts, mask, logits, gt)
    return out[0]


# ---------------------------------------------------------------------------
# Host-side glue: matcher, gather + lane-dense packing, criterion
# ---------------------------------------------------------------------------

_BBOX_PAD = np.array([0.5, 0.5, 1.0, 1.0], np.float32)   # benign pad box (giou == 1)


def _round_up(n, m):
    return ((n + m - 1) // m) * m


def _src_permutation_idx(indices):
    batch_idx = np.concatenate([np.full_like(src, i) for i, (src, _) in enumerate(indices)])
    src_idx = np.concatenate([src for src, _ in indices])
    return batch_idx.astype(np.int64), src_idx.astype(np.int64)


def _gather_lane_dense(pred_np, targets_np, tkey, indices, pad_row):
    """Host gather of matched (src, tgt) pairs into a lane-dense [2C, Mp] slab."""
    b_idx, s_idx = _src_permutation_idx(indices)
    src = np.asarray(pred_np, np.float32)[b_idx, s_idx]                       # [M, C]
    tgt = np.concatenate(
        [np.asarray(t[tkey], np.float32)[np.asarray(i)]
         for t, (_, i) in zip(targets_np, indices)], axis=0)                  # [M, C]
    M, C = src.shape
    Mp = max(_round_up(max(M, 1), 128), 128)
    pad = np.asarray(pad_row, np.float32).reshape(C, 1)
    slab = np.empty((2 * C, Mp), np.float32)
    slab[:C, :] = pad
    slab[C:, :] = pad
    slab[:C, :M] = src.T
    slab[C:, :M] = tgt.T
    mask = np.zeros((1, Mp), np.float32)
    mask[0, :M] = 1.0
    return slab, mask, (b_idx, s_idx)


_TGT_KEY = {'pred_block': 'block_bbox', 'pred_line1': 'line1_bbox',
            'pred_line2': 'line2_bezier'}


def simple_matcher(outputs_single, targets):
    # TODO(synk): DETR's HungarianMatcher uses scipy linear_sum_assignment (host-side,
    # combinatorial) — replaced with a deterministic greedy L1 matching on host.
    (k, pred), = outputs_single.items()
    tkey = _TGT_KEY[k]
    pred_np = np.asarray(pred)      # already numpy: single batched device_get upstream
    indices = []
    for b, t in enumerate(targets):
        tgt_np = np.asarray(t[tkey])
        nt = tgt_np.shape[0]
        cost = np.abs(pred_np[b][:, None, :] - tgt_np[None, :, :]).sum(-1)    # [Q, nt]
        used, src_idx, tgt_idx = set(), [], []
        for j in range(nt):
            for i in np.argsort(cost[:, j], kind='stable'):
                if int(i) not in used:
                    used.add(int(i))
                    src_idx.append(int(i))
                    tgt_idx.append(j)
                    break
        indices.append((np.asarray(src_idx, np.int32), np.asarray(tgt_idx, np.int32)))
    return indices


class SetCriterion:
    """Pallas-backed equivalent of the PyTorch SetCriterion forward pass."""

    def __init__(self, matcher, weight_dict, eos_coef, losses):
        self.matcher = matcher
        self.weight_dict = weight_dict
        self.eos_coef = eos_coef
        self.losses = losses

    # --- index plumbing -------------------------------------------------------
    def _get_src_permutation_idx(self, indices):
        return _src_permutation_idx(indices)

    @staticmethod
    def _gt_prob(idx, B, Q):
        gt = np.zeros((B, Q), np.float32)
        b_idx, s_idx = idx
        gt[b_idx, s_idx] = 1.0
        return gt

    # --- individual losses ----------------------------------------------------
    def _bbox_losses(self, name, pkey, tkey, probkey, outputs, targets, indices, num_boxes):
        pred = np.asarray(outputs[pkey], np.float32)                          # [B, Q, 4]
        B, Q = pred.shape[0], pred.shape[1]
        slab, mask, idx = _gather_lane_dense(pred, targets, tkey, indices, _BBOX_PAD)
        has_prob = probkey in outputs
        logits = (np.asarray(outputs[probkey], np.float32)[..., 0] if has_prob
                  else np.zeros((B, Q), np.float32))
        gt = self._gt_prob(idx, B, Q)
        inv_num = np.array([[1.0 / num_boxes]], np.float32)
        pred_t = np.ascontiguousarray(pred.transpose(0, 2, 1))   # host transpose, no XLA op
        vals = bbox_head_losses(inv_num, slab, mask, pred, pred_t, logits, gt)
        losses = {
            f'loss_{name}_bbox': vals[0],
            f'loss_{name}_giou': vals[1],
            f'loss_overlap_{name}': vals[2],
        }
        if has_prob:
            losses[f'loss_{name}_prob'] = vals[3]
        return losses

    def loss_block_bbox(self, outputs, targets, indices, num_boxes):
        assert 'pred_block' in outputs
        return self._bbox_losses('block', 'pred_block', 'block_bbox', 'pred_block_prob',
                                 outputs, targets, indices, num_boxes)

    def loss_line1_bbox(self, outputs, targets, indices, num_boxes):
        assert 'pred_line1' in outputs
        return self._bbox_losses('line1', 'pred_line1', 'line1_bbox', 'pred_line1_prob',
                                 outputs, targets, indices, num_boxes)

    def loss_line2_bezier(self, outputs, targets, indices, num_points):
        assert 'pred_line2' in outputs
        pred = np.asarray(outputs['pred_line2'], np.float32)                  # [B, Q, C]
        B, Q, C = pred.shape
        slab, mask, idx = _gather_lane_dense(pred, targets, 'line2_bezier', indices,
                                             np.zeros((C,), np.float32))
        has_prob = 'pred_line2_prob' in outputs
        logits = (np.asarray(outputs['pred_line2_prob'], np.float32)[..., 0] if has_prob
                  else np.zeros((B, Q), np.float32))
        gt = self._gt_prob(idx, B, Q)
        inv_num = np.array([[1.0 / num_points]], np.float32)
        vals = bezier_head_losses(inv_num, slab, mask, logits, gt)
        losses = {'loss_line2_bezier': vals[0]}
        if has_prob:
            losses['loss_line2_prob'] = vals[1]
        return losses

    def get_loss(self, loss, outputs, targets, indices, num):
        loss_map = {'loss_block_bbox': self.loss_block_bbox,
                    'loss_line1_bbox': self.loss_line1_bbox,
                    'loss_line2_bezier': self.loss_line2_bezier}
        assert loss in loss_map, f'do you really want to compute {loss} loss?'
        return loss_map[loss](outputs, targets, indices, num)

    # --- forward ----------------------------------------------------------------
    def __call__(self, outputs, targets):
        loss_dict = {'pred_block': 'loss_block_bbox', 'pred_line1': 'loss_line1_bbox',
                     'pred_line2': 'loss_line2_bezier'}
        targets_dict = {'pred_block': 'block_bbox', 'pred_line1': 'line1_bbox',
                        'pred_line2': 'line2_bezier'}

        # One batched device->host transfer for everything the host matcher and the
        # numpy gather/pad path need (replaces per-head / per-aux-layer syncs).
        host_outputs, host_targets = jax.device_get((outputs, targets))
        outputs_without_aux = {k: v for k, v in host_outputs.items() if k != 'aux_outputs'}

        losses = {}
        num = 1.0
        for k, v in outputs_without_aux.items():
            if 'prob' in k:
                continue
            indices = self.matcher({k: v}, host_targets)
            # TODO(synk): distributed all_reduce / get_world_size omitted (single host).
            num = float(max(sum(len(t[targets_dict[k]]) for t in host_targets), 1.0))
            losses.update(self.get_loss(loss_dict[k], host_outputs, host_targets, indices, num))
        if 'aux_outputs' in host_outputs:
            for i, aux_outputs in enumerate(host_outputs['aux_outputs']):
                for key, value in aux_outputs.items():
                    if 'prob' in key:
                        continue
                    indices = self.matcher({key: value}, host_targets)
                    l_dict = self.get_loss(loss_dict[key], aux_outputs, host_targets,
                                           indices, num)
                    losses.update({k1 + f'_{i}': v1 for k1, v1 in l_dict.items()})
        return losses


# ---------------------------------------------------------------------------
# Demo
# ---------------------------------------------------------------------------

if __name__ == "__main__":
    key = jax.random.PRNGKey(0)
    B, Q = 2, 8            # batch, number of queries
    keys = jax.random.split(key, 12)

    outputs = {
        'pred_block':      jax.nn.sigmoid(jax.random.normal(keys[0], (B, Q, 4), jnp.float32)),
        'pred_block_prob': jax.random.normal(keys[1], (B, Q, 1), jnp.float32),
        'pred_line1':      jax.nn.sigmoid(jax.random.normal(keys[2], (B, Q, 4), jnp.float32)),
        'pred_line1_prob': jax.random.normal(keys[3], (B, Q, 1), jnp.float32),
        'pred_line2':      jax.nn.sigmoid(jax.random.normal(keys[4], (B, Q, 8), jnp.float32)),
        'pred_line2_prob': jax.random.normal(keys[5], (B, Q, 1), jnp.float32),
    }

    n_targets = [3, 2]
    targets = []
    for b in range(B):
        targets.append({
            'block_bbox':   jax.nn.sigmoid(jax.random.normal(keys[6 + b], (n_targets[b], 4), jnp.float32)),
            'line1_bbox':   jax.nn.sigmoid(jax.random.normal(keys[8 + b], (n_targets[b], 4), jnp.float32)),
            'line2_bezier': jax.nn.sigmoid(jax.random.normal(keys[10 + b], (n_targets[b], 8), jnp.float32)),
        })

    criterion = SetCriterion(matcher=simple_matcher,
                             weight_dict={'loss_block_bbox': 1.0, 'loss_block_giou': 1.0},
                             eos_coef=0.1,
                             losses=['loss_block_bbox', 'loss_line1_bbox', 'loss_line2_bezier'])

    losses = criterion(outputs, targets)
    jax.block_until_ready(losses)
    for name, val in losses.items():
        assert np.isfinite(np.asarray(val)).all(), name
    print("KERNEL_OK")
</pallas_src>

<mosaic_0001>
module attributes {stable_mosaic.version = 11 : i64} {
  func.func @_bbox_head_kernel(%arg0: memref<1x1xf32, #tpu.memory_space<smem>>, %arg1: memref<8x128xf32, #tpu.memory_space<vmem>>, %arg2: memref<1x128xf32, #tpu.memory_space<vmem>>, %arg3: memref<2x8x4xf32, #tpu.memory_space<vmem>>, %arg4: memref<2x4x8xf32, #tpu.memory_space<vmem>>, %arg5: memref<2x8xf32, #tpu.memory_space<vmem>>, %arg6: memref<2x8xf32, #tpu.memory_space<vmem>>, %arg7: memref<1x4xf32, #tpu.memory_space<smem>>) attributes {dimension_semantics = [], scalar_prefetch = 0 : i64, scratch_operands = 0 : i64, tpu.core_type = #tpu.core_type<tc>} {
    %c0 = arith.constant 0 : index
    %c0_0 = arith.constant 0 : index
    %0 = memref.load %arg0[%c0, %c0_0] : memref<1x1xf32, #tpu.memory_space<smem>>
    %c0_1 = arith.constant 0 : index
    %c0_2 = arith.constant 0 : index
    %1 = vector.load %arg1[%c0_1, %c0_2] : memref<8x128xf32, #tpu.memory_space<vmem>>, vector<8x128xf32>
    %2 = vector.extract_strided_slice %1 {offsets = [0, 0], sizes = [4, 128], strides = [1, 1]} : vector<8x128xf32> to vector<4x128xf32>
    %3 = vector.extract_strided_slice %1 {offsets = [4, 0], sizes = [4, 128], strides = [1, 1]} : vector<8x128xf32> to vector<4x128xf32>
    %c0_3 = arith.constant 0 : index
    %c0_4 = arith.constant 0 : index
    %4 = vector.load %arg2[%c0_3, %c0_4] : memref<1x128xf32, #tpu.memory_space<vmem>>, vector<1x128xf32>
    %5 = vector.broadcast %0 : f32 to vector<1x128xf32>
    %6 = arith.mulf %4, %5 : vector<1x128xf32>
    %7 = arith.subf %2, %3 : vector<4x128xf32>
    %8 = math.absf %7 : vector<4x128xf32>
    %9 = vector.broadcast %6 : vector<1x128xf32> to vector<4x128xf32>
    %10 = arith.mulf %8, %9 : vector<4x128xf32>
    %11 = vector.shape_cast %10 : vector<4x128xf32> to vector<1x4x128xf32>
    %cst = arith.constant dense<0.000000e+00> : vector<1xf32>
    %12 = vector.multi_reduction <add>, %11, %cst [1, 2] : vector<1x4x128xf32> to vector<1xf32>
    %13 = vector.shape_cast %12 : vector<1xf32> to vector<1x1x1xf32>
    %14 = vector.extract %13[0, 0, 0] : f32 from vector<1x1x1xf32>
    %c0_5 = arith.constant 0 : index
    %c0_6 = arith.constant 0 : index
    %15 = memref.load %arg7[%c0_5, %c0_6] : memref<1x4xf32, #tpu.memory_space<smem>>
    memref.store %14, %arg7[%c0_5, %c0_6] : memref<1x4xf32, #tpu.memory_space<smem>>
    %16 = vector.extract_strided_slice %2 {offsets = [0, 0], sizes = [1, 128], strides = [1, 1]} : vector<4x128xf32> to vector<1x128xf32>
    %17 = vector.extract_strided_slice %2 {offsets = [1, 0], sizes = [1, 128], strides = [1, 1]} : vector<4x128xf32> to vector<1x128xf32>
    %18 = vector.extract_strided_slice %2 {offsets = [2, 0], sizes = [1, 128], strides = [1, 1]} : vector<4x128xf32> to vector<1x128xf32>
    %19 = vector.extract_strided_slice %2 {offsets = [3, 0], sizes = [1, 128], strides = [1, 1]} : vector<4x128xf32> to vector<1x128xf32>
    %cst_7 = arith.constant 5.000000e-01 : f32
    %20 = vector.broadcast %cst_7 : f32 to vector<1x128xf32>
    %21 = arith.mulf %20, %18 : vector<1x128xf32>
    %22 = arith.subf %16, %21 : vector<1x128xf32>
    %cst_8 = arith.constant 5.000000e-01 : f32
    %23 = vector.broadcast %cst_8 : f32 to vector<1x128xf32>
    %24 = arith.mulf %23, %19 : vector<1x128xf32>
    %25 = arith.subf %17, %24 : vector<1x128xf32>
    %cst_9 = arith.constant 5.000000e-01 : f32
    %26 = vector.broadcast %cst_9 : f32 to vector<1x128xf32>
    %27 = arith.mulf %26, %18 : vector<1x128xf32>
    %28 = arith.addf %16, %27 : vector<1x128xf32>
    %cst_10 = arith.constant 5.000000e-01 : f32
    %29 = vector.broadcast %cst_10 : f32 to vector<1x128xf32>
    %30 = arith.mulf %29, %19 : vector<1x128xf32>
    %31 = arith.addf %17, %30 : vector<1x128xf32>
    %32 = vector.extract_strided_slice %3 {offsets = [0, 0], sizes = [1, 128], strides = [1, 1]} : vector<4x128xf32> to vector<1x128xf32>
    %33 = vector.extract_strided_slice %3 {offsets = [1, 0], sizes = [1, 128], strides = [1, 1]} : vector<4x128xf32> to vector<1x128xf32>
    %34 = vector.extract_strided_slice %3 {offsets = [2, 0], sizes = [1, 128], strides = [1, 1]} : vector<4x128xf32> to vector<1x128xf32>
    %35 = vector.extract_strided_slice %3 {offsets = [3, 0], sizes = [1, 128], strides = [1, 1]} : vector<4x128xf32> to vector<1x128xf32>
    %cst_11 = arith.constant 5.000000e-01 : f32
    %36 = vector.broadcast %cst_11 : f32 to vector<1x128xf32>
    %37 = arith.mulf %36, %34 : vector<1x128xf32>
    %38 = arith.subf %32, %37 : vector<1x128xf32>
    %cst_12 = arith.constant 5.000000e-01 : f32
    %39 = vector.broadcast %cst_12 : f32 to vector<1x128xf32>
    %40 = arith.mulf %39, %35 : vector<1x128xf32>
    %41 = arith.subf %33, %40 : vector<1x128xf32>
    %cst_13 = arith.constant 5.000000e-01 : f32
    %42 = vector.broadcast %cst_13 : f32 to vector<1x128xf32>
    %43 = arith.mulf %42, %34 : vector<1x128xf32>
    %44 = arith.addf %32, %43 : vector<1x128xf32>
    %cst_14 = arith.constant 5.000000e-01 : f32
    %45 = vector.broadcast %cst_14 : f32 to vector<1x128xf32>
    %46 = arith.mulf %45, %35 : vector<1x128xf32>
    %47 = arith.addf %33, %46 : vector<1x128xf32>
    %48 = arith.subf %28, %22 : vector<1x128xf32>
    %49 = arith.subf %31, %25 : vector<1x128xf32>
    %50 = arith.mulf %48, %49 : vector<1x128xf32>
    %51 = arith.subf %44, %38 : vector<1x128xf32>
    %52 = arith.subf %47, %41 : vector<1x128xf32>
    %53 = arith.mulf %51, %52 : vector<1x128xf32>
    %54 = arith.minimumf %28, %44 : vector<1x128xf32>
    %55 = arith.maximumf %22, %38 : vector<1x128xf32>
    %56 = arith.subf %54, %55 : vector<1x128xf32>
    %cst_15 = arith.constant 0.000000e+00 : f32
    %57 = vector.broadcast %cst_15 : f32 to vector<1x128xf32>
    %58 = arith.maximumf %56, %57 : vector<1x128xf32>
    %59 = arith.minimumf %31, %47 : vector<1x128xf32>
    %60 = arith.maximumf %25, %41 : vector<1x128xf32>
    %61 = arith.subf %59, %60 : vector<1x128xf32>
    %cst_16 = arith.constant 0.000000e+00 : f32
    %62 = vector.broadcast %cst_16 : f32 to vector<1x128xf32>
    %63 = arith.maximumf %61, %62 : vector<1x128xf32>
    %64 = arith.mulf %58, %63 : vector<1x128xf32>
    %65 = arith.addf %50, %53 : vector<1x128xf32>
    %66 = arith.subf %65, %64 : vector<1x128xf32>
    %cst_17 = arith.constant 1.000000e-07 : f32
    %67 = vector.broadcast %cst_17 : f32 to vector<1x128xf32>
    %68 = arith.maximumf %66, %67 : vector<1x128xf32>
    %69 = tpu.reciprocal %68 {approx = true} : vector<1x128xf32> -> vector<1x128xf32>
    %70 = arith.mulf %64, %69 : vector<1x128xf32>
    %71 = arith.maximumf %28, %44 : vector<1x128xf32>
    %72 = arith.minimumf %22, %38 : vector<1x128xf32>
    %73 = arith.subf %71, %72 : vector<1x128xf32>
    %74 = arith.maximumf %31, %47 : vector<1x128xf32>
    %75 = arith.minimumf %25, %41 : vector<1x128xf32>
    %76 = arith.subf %74, %75 : vector<1x128xf32>
    %77 = arith.mulf %73, %76 : vector<1x128xf32>
    %cst_18 = arith.constant 1.000000e-07 : f32
    %78 = vector.broadcast %cst_18 : f32 to vector<1x128xf32>
    %79 = arith.maximumf %77, %78 : vector<1x128xf32>
    %80 = arith.subf %79, %66 : vector<1x128xf32>
    %81 = tpu.reciprocal %79 {approx = true} : vector<1x128xf32> -> vector<1x128xf32>
    %82 = arith.mulf %80, %81 : vector<1x128xf32>
    %83 = arith.subf %70, %82 : vector<1x128xf32>
    %cst_19 = arith.constant 1.000000e+00 : f32
    %84 = vector.broadcast %cst_19 : f32 to vector<1x128xf32>
    %85 = arith.subf %84, %83 : vector<1x128xf32>
    %86 = arith.mulf %85, %6 : vector<1x128xf32>
    %87 = vector.shape_cast %86 : vector<1x128xf32> to vector<1x1x128xf32>
    %cst_20 = arith.constant dense<0.000000e+00> : vector<1xf32>
    %88 = vector.multi_reduction <add>, %87, %cst_20 [1, 2] : vector<1x1x128xf32> to vector<1xf32>
    %89 = vector.shape_cast %88 : vector<1xf32> to vector<1x1x1xf32>
    %90 = vector.extract %89[0, 0, 0] : f32 from vector<1x1x1xf32>
    %c0_21 = arith.constant 0 : index
    %c1 = arith.constant 1 : index
    %91 = memref.load %arg7[%c0_21, %c1] : memref<1x4xf32, #tpu.memory_space<smem>>
    memref.store %90, %arg7[%c0_21, %c1] : memref<1x4xf32, #tpu.memory_space<smem>>
    %c0_22 = arith.constant 0 : index
    %c0_23 = arith.constant 0 : index
    %c0_24 = arith.constant 0 : index
    %92 = vector.load %arg3[%c0_22, %c0_23, %c0_24] : memref<2x8x4xf32, #tpu.memory_space<vmem>>, vector<2x8x4xf32>
    %c0_25 = arith.constant 0 : index
    %c0_26 = arith.constant 0 : index
    %c0_27 = arith.constant 0 : index
    %93 = vector.load %arg4[%c0_25, %c0_26, %c0_27] : memref<2x4x8xf32, #tpu.memory_space<vmem>>, vector<2x4x8xf32>
    %94 = vector.extract_strided_slice %92 {offsets = [0, 0, 0], sizes = [2, 8, 1], strides = [1, 1, 1]} : vector<2x8x4xf32> to vector<2x8x1xf32>
    %95 = vector.extract_strided_slice %92 {offsets = [0, 0, 1], sizes = [2, 8, 1], strides = [1, 1, 1]} : vector<2x8x4xf32> to vector<2x8x1xf32>
    %96 = vector.extract_strided_slice %92 {offsets = [0, 0, 2], sizes = [2, 8, 1], strides = [1, 1, 1]} : vector<2x8x4xf32> to vector<2x8x1xf32>
    %97 = vector.extract_strided_slice %92 {offsets = [0, 0, 3], sizes = [2, 8, 1], strides = [1, 1, 1]} : vector<2x8x4xf32> to vector<2x8x1xf32>
    %cst_28 = arith.constant 5.000000e-01 : f32
    %98 = vector.broadcast %cst_28 : f32 to vector<2x8x1xf32>
    %99 = arith.mulf %98, %96 : vector<2x8x1xf32>
    %100 = arith.subf %94, %99 : vector<2x8x1xf32>
    %cst_29 = arith.constant 5.000000e-01 : f32
    %101 = vector.broadcast %cst_29 : f32 to vector<2x8x1xf32>
    %102 = arith.mulf %101, %97 : vector<2x8x1xf32>
    %103 = arith.subf %95, %102 : vector<2x8x1xf32>
    %cst_30 = arith.constant 5.000000e-01 : f32
    %104 = vector.broadcast %cst_30 : f32 to vector<2x8x1xf32>
    %105 = arith.mulf %104, %96 : vector<2x8x1xf32>
    %106 = arith.addf %94, %105 : vector<2x8x1xf32>
    %cst_31 = arith.constant 5.000000e-01 : f32
    %107 = vector.broadcast %cst_31 : f32 to vector<2x8x1xf32>
    %108 = arith.mulf %107, %97 : vector<2x8x1xf32>
    %109 = arith.addf %95, %108 : vector<2x8x1xf32>
    %110 = vector.extract_strided_slice %93 {offsets = [0, 0, 0], sizes = [2, 1, 8], strides = [1, 1, 1]} : vector<2x4x8xf32> to vector<2x1x8xf32>
    %111 = vector.extract_strided_slice %93 {offsets = [0, 1, 0], sizes = [2, 1, 8], strides = [1, 1, 1]} : vector<2x4x8xf32> to vector<2x1x8xf32>
    %112 = vector.extract_strided_slice %93 {offsets = [0, 2, 0], sizes = [2, 1, 8], strides = [1, 1, 1]} : vector<2x4x8xf32> to vector<2x1x8xf32>
    %113 = vector.extract_strided_slice %93 {offsets = [0, 3, 0], sizes = [2, 1, 8], strides = [1, 1, 1]} : vector<2x4x8xf32> to vector<2x1x8xf32>
    %cst_32 = arith.constant 5.000000e-01 : f32
    %114 = vector.broadcast %cst_32 : f32 to vector<2x1x8xf32>
    %115 = arith.mulf %114, %112 : vector<2x1x8xf32>
    %116 = arith.subf %110, %115 : vector<2x1x8xf32>
    %cst_33 = arith.constant 5.000000e-01 : f32
    %117 = vector.broadcast %cst_33 : f32 to vector<2x1x8xf32>
    %118 = arith.mulf %117, %113 : vector<2x1x8xf32>
    %119 = arith.subf %111, %118 : vector<2x1x8xf32>
    %cst_34 = arith.constant 5.000000e-01 : f32
    %120 = vector.broadcast %cst_34 : f32 to vector<2x1x8xf32>
    %121 = arith.mulf %120, %112 : vector<2x1x8xf32>
    %122 = arith.addf %110, %121 : vector<2x1x8xf32>
    %cst_35 = arith.constant 5.000000e-01 : f32
    %123 = vector.broadcast %cst_35 : f32 to vector<2x1x8xf32>
    %124 = arith.mulf %123, %113 : vector<2x1x8xf32>
    %125 = arith.addf %111, %124 : vector<2x1x8xf32>
    %126 = vector.broadcast %106 : vector<2x8x1xf32> to vector<2x8x8xf32>
    %127 = vector.broadcast %122 : vector<2x1x8xf32> to vector<2x8x8xf32>
    %128 = arith.minimumf %126, %127 : vector<2x8x8xf32>
    %129 = vector.broadcast %100 : vector<2x8x1xf32> to vector<2x8x8xf32>
    %130 = vector.broadcast %116 : vector<2x1x8xf32> to vector<2x8x8xf32>
    %131 = arith.maximumf %129, %130 : vector<2x8x8xf32>
    %132 = arith.subf %128, %131 : vector<2x8x8xf32>
    %cst_36 = arith.constant 0.000000e+00 : f32
    %133 = vector.broadcast %cst_36 : f32 to vector<2x8x8xf32>
    %134 = arith.maximumf %132, %133 : vector<2x8x8xf32>
    %135 = vector.broadcast %109 : vector<2x8x1xf32> to vector<2x8x8xf32>
    %136 = vector.broadcast %125 : vector<2x1x8xf32> to vector<2x8x8xf32>
    %137 = arith.minimumf %135, %136 : vector<2x8x8xf32>
    %138 = vector.broadcast %103 : vector<2x8x1xf32> to vector<2x8x8xf32>
    %139 = vector.broadcast %119 : vector<2x1x8xf32> to vector<2x8x8xf32>
    %140 = arith.maximumf %138, %139 : vector<2x8x8xf32>
    %141 = arith.subf %137, %140 : vector<2x8x8xf32>
    %cst_37 = arith.constant 0.000000e+00 : f32
    %142 = vector.broadcast %cst_37 : f32 to vector<2x8x8xf32>
    %143 = arith.maximumf %141, %142 : vector<2x8x8xf32>
    %144 = arith.mulf %134, %143 : vector<2x8x8xf32>
    %145 = arith.subf %106, %100 : vector<2x8x1xf32>
    %146 = arith.subf %109, %103 : vector<2x8x1xf32>
    %147 = arith.mulf %145, %146 : vector<2x8x1xf32>
    %148 = arith.subf %122, %116 : vector<2x1x8xf32>
    %149 = arith.subf %125, %119 : vector<2x1x8xf32>
    %150 = arith.mulf %148, %149 : vector<2x1x8xf32>
    %151 = vector.broadcast %147 : vector<2x8x1xf32> to vector<2x8x8xf32>
    %152 = vector.broadcast %150 : vector<2x1x8xf32> to vector<2x8x8xf32>
    %153 = arith.addf %151, %152 : vector<2x8x8xf32>
    %154 = arith.subf %153, %144 : vector<2x8x8xf32>
    %cst_38 = arith.constant 1.000000e-07 : f32
    %155 = vector.broadcast %cst_38 : f32 to vector<2x8x8xf32>
    %156 = arith.maximumf %154, %155 : vector<2x8x8xf32>
    %157 = tpu.reciprocal %156 {approx = true} : vector<2x8x8xf32> -> vector<2x8x8xf32>
    %158 = arith.mulf %144, %157 : vector<2x8x8xf32>
    %159 = arith.subf %122, %116 : vector<2x1x8xf32>
    %cst_39 = arith.constant 0.000000e+00 : f32
    %160 = vector.broadcast %cst_39 : f32 to vector<2x1x8xf32>
    %161 = arith.maximumf %159, %160 : vector<2x1x8xf32>
    %162 = arith.subf %125, %119 : vector<2x1x8xf32>
    %cst_40 = arith.constant 0.000000e+00 : f32
    %163 = vector.broadcast %cst_40 : f32 to vector<2x1x8xf32>
    %164 = arith.maximumf %162, %163 : vector<2x1x8xf32>
    %165 = arith.mulf %161, %164 : vector<2x1x8xf32>
    %166 = arith.subf %122, %116 : vector<2x1x8xf32>
    %167 = arith.subf %125, %119 : vector<2x1x8xf32>
    %168 = arith.mulf %166, %167 : vector<2x1x8xf32>
    %169 = arith.addf %168, %168 : vector<2x1x8xf32>
    %170 = arith.subf %169, %165 : vector<2x1x8xf32>
    %cst_41 = arith.constant 1.000000e-07 : f32
    %171 = vector.broadcast %cst_41 : f32 to vector<2x1x8xf32>
    %172 = arith.maximumf %170, %171 : vector<2x1x8xf32>
    %173 = tpu.reciprocal %172 {approx = true} : vector<2x1x8xf32> -> vector<2x1x8xf32>
    %174 = arith.mulf %165, %173 : vector<2x1x8xf32>
    %cst_42 = arith.constant 0.00892857183 : f32
    %175 = vector.broadcast %cst_42 : f32 to vector<2x8x8xf32>
    %176 = arith.mulf %158, %175 : vector<2x8x8xf32>
    %177 = vector.shape_cast %176 : vector<2x8x8xf32> to vector<1x2x8x8xf32>
    %cst_43 = arith.constant dense<0.000000e+00> : vector<1xf32>
    %178 = vector.multi_reduction <add>, %177, %cst_43 [1, 2, 3] : vector<1x2x8x8xf32> to vector<1xf32>
    %179 = vector.shape_cast %178 : vector<1xf32> to vector<1x1x1x1xf32>
    %180 = vector.extract %179[0, 0, 0, 0] : f32 from vector<1x1x1x1xf32>
    %cst_44 = arith.constant 0.00892857183 : f32
    %181 = vector.broadcast %cst_44 : f32 to vector<2x1x8xf32>
    %182 = arith.mulf %174, %181 : vector<2x1x8xf32>
    %183 = vector.shape_cast %182 : vector<2x1x8xf32> to vector<1x2x1x8xf32>
    %cst_45 = arith.constant dense<0.000000e+00> : vector<1xf32>
    %184 = vector.multi_reduction <add>, %183, %cst_45 [1, 2, 3] : vector<1x2x1x8xf32> to vector<1xf32>
    %185 = vector.shape_cast %184 : vector<1xf32> to vector<1x1x1x1xf32>
    %186 = vector.extract %185[0, 0, 0, 0] : f32 from vector<1x1x1x1xf32>
    %187 = arith.subf %180, %186 : f32
    %c0_46 = arith.constant 0 : index
    %c2 = arith.constant 2 : index
    %188 = memref.load %arg7[%c0_46, %c2] : memref<1x4xf32, #tpu.memory_space<smem>>
    memref.store %187, %arg7[%c0_46, %c2] : memref<1x4xf32, #tpu.memory_space<smem>>
    %c0_47 = arith.constant 0 : index
    %c0_48 = arith.constant 0 : index
    %189 = vector.load %arg5[%c0_47, %c0_48] : memref<2x8xf32, #tpu.memory_space<vmem>>, vector<2x8xf32>
    %c0_49 = arith.constant 0 : index
    %c0_50 = arith.constant 0 : index
    %190 = vector.load %arg6[%c0_49, %c0_50] : memref<2x8xf32, #tpu.memory_space<vmem>>, vector<2x8xf32>
    %cst_51 = arith.constant dense<0xFF800000> : vector<2xf32>
    %191 = vector.multi_reduction <maximumf>, %189, %cst_51 [1] : vector<2x8xf32> to vector<2xf32>
    %192 = vector.shape_cast %191 : vector<2xf32> to vector<2x1xf32>
    %193 = vector.broadcast %192 : vector<2x1xf32> to vector<2x8xf32>
    %194 = arith.subf %189, %193 : vector<2x8xf32>
    %195 = math.exp %194 : vector<2x8xf32>
    %cst_52 = arith.constant dense<0.000000e+00> : vector<2xf32>
    %196 = vector.multi_reduction <add>, %195, %cst_52 [1] : vector<2x8xf32> to vector<2xf32>
    %197 = vector.shape_cast %196 : vector<2xf32> to vector<2x1xf32>
    %198 = math.log %197 : vector<2x1xf32>
    %cst_53 = arith.constant 0.000000e+00 : f32
    %199 = vector.broadcast %cst_53 : f32 to vector<2x8xf32>
    %200 = arith.subf %199, %190 : vector<2x8xf32>
    %cst_54 = arith.constant 5.000000e-01 : f32
    %201 = vector.broadcast %cst_54 : f32 to vector<2x8xf32>
    %202 = arith.mulf %200, %201 : vector<2x8xf32>
    %203 = vector.broadcast %198 : vector<2x1xf32> to vector<2x8xf32>
    %204 = arith.subf %194, %203 : vector<2x8xf32>
    %205 = arith.mulf %202, %204 : vector<2x8xf32>
    %206 = vector.shape_cast %205 : vector<2x8xf32> to vector<1x2x8xf32>
    %cst_55 = arith.constant dense<0.000000e+00> : vector<1xf32>
    %207 = vector.multi_reduction <add>, %206, %cst_55 [1, 2] : vector<1x2x8xf32> to vector<1xf32>
    %208 = vector.shape_cast %207 : vector<1xf32> to vector<1x1x1xf32>
    %209 = vector.extract %208[0, 0, 0] : f32 from vector<1x1x1xf32>
    %c0_56 = arith.constant 0 : index
    %c3 = arith.constant 3 : index
    %210 = memref.load %arg7[%c0_56, %c3] : memref<1x4xf32, #tpu.memory_space<smem>>
    memref.store %209, %arg7[%c0_56, %c3] : memref<1x4xf32, #tpu.memory_space<smem>>
    return
  }
}

</mosaic_0001>

<bundles_post_ra>
// kernel: bbox_head_losses.1
= control target key start
LH: loop header
LB: loop body
LE: loop exit
PB: predicated region body
PF: predicated region fallthrough
CT: control target
= control target key end

     0   :  { %vm339_vm0 = vcmask 58368   ;;  %v427_v5 = vmov 0   ;;  %s583_s0 = inlined_call_operand.<no memory space> [shape: f32[1,1], index: 0, kind: input, shape index: {}]   ;;  %s584_s1 = inlined_call_operand.vmem [shape: f32[8,128], index: 1, kind: input, shape index: {}]   ;;  %s585_s2 = inlined_call_operand.vmem [shape: f32[1,128], index: 2, kind: input, shape index: {}]   ;;  %s586_s3 = inlined_call_operand.vmem [shape: f32[2,8,4], index: 3, kind: input, shape index: {}]   ;;  %s587_s4 = inlined_call_operand.vmem [shape: f32[2,4,8], index: 4, kind: input, shape index: {}]   ;;  %s588_s5 = inlined_call_operand.vmem [shape: f32[2,8], index: 5, kind: input, shape index: {}]   ;;  %s589_s6 = inlined_call_operand.vmem [shape: f32[2,8], index: 6, kind: input, shape index: {}]   ;;  %s590_s7 = inlined_call_operand.hbm [shape: f32[1,4], index: 7, kind: output, shape index: {}]  }
   0x1   :  { %v118_v0 = vld [vmem:[%s586_s3] sm:$0xff]  ;;  %v119_v1 = vld [vmem:[%s586_s3 + $0x8] sm:$0xff]  ;;  %395 = vset.pattern.permute.xlu0 %v427_v5 }
   0x2   :  { %v481_v2 = vld [vmem:[%s588_s5] sm:$0x3]  ;;  %v122_v3 = vmul.f32 0.5, %v118_v0 }
   0x3   :  { %v340_v4 = vsel %vm339_vm0, %v481_v2, -inf }
   0x4   :  { %341 = vmax.xlane.f32.xlu1 %v340_v4 }
   0x5   :  { %13 = vsyncpa [#allocation4], 0  ;;  %s428_s30 = smov 126   ;;  %v123_v6 = vmul.f32 0.5, %v119_v1  ;;  %396 = vset.pattern.permute.xlu1 %v427_v5  ;;  %v120_v7 = vld [vmem:[%s587_s4] sm:$0xf]  ;;  %v39_v10 = vlaneseq }
   0x6   :  { %126 = vrot.lane.b32.xlu0 %v122_v3, %s428_s30  ;;  %v136_v8 = vmul.f32 0.5, %v120_v7  ;;  %s429_s5 = smov 127   ;;  %v430_v25 = vmov 1   ;;  %v510_v26 = vld [vmem:[%s584_s1] sm:$0xff]  ;;  %vm45_vm1 = vcmask 1043456   ;;  %vm105_vm2 = vcmask 1040384  }
   0x7   :  { %v490_v16 = vshrl.u32 %v39_v10, 7  ;;  %v121_v27 = vld [vmem:[%s587_s4 + $0x4] sm:$0xf]  ;;  %v58_v28 = vmul.f32 0.5, %v510_v26  ;;  %vm321_vm3 = vcmask 57344   ;;  %vm306_vm4 = vcmask 64512  }
   0x8   :  { %v140_v14 = vrot.slane %v136_v8, 2  ;;  %v137_v30 = vmul.f32 0.5, %v121_v27  ;;  %s431_s20 = smov [#allocation3]  }
   0x9   :  { %v496_v20 = vsub.s32 1, %v490_v16  ;;  %v60_v29 = vrot.slane %v58_v28, 2 }
   0xa   :  { %128 = vrot.lane.b32.xlu0 %v123_v6, %s428_s30  ;;  %v493_v19 = vadd.f32 %v140_v14, %v120_v7  ;;  %v503_v23 = vsub.f32 %v120_v7, %v140_v14  ;;  %v141_v35 = vrot.slane %v137_v30, 2 }
   0xb   :  { %v62_v31 = vsub.f32 %v510_v26, %v60_v29  ;;  %v63_v32 = vadd.f32 %v60_v29, %v510_v26  ;;  %v34_v29 = vrot.slane %v510_v26, 4 }
   0xc   :  { %v203_v22 = vrot.slane %v493_v19, %v496_v20  ;;  %v221_v24 = vrot.slane %v503_v23, %v496_v20  ;;  %v246_v39 = vsub.f32 %v493_v19, %v503_v23  ;;  %v520_v42 = vadd.f32 %v141_v35, %v121_v27 }
   0xd   :  { %v70_v33 = vrot.slane %v63_v32, 4  ;;  %v74_v34 = vrot.slane %v62_v31, 4  ;;  %v64_v36 = vsub.f32 %v63_v32, %v62_v31  ;;  %v522_v43 = vsub.f32 %v121_v27, %v141_v35 }
   0xe   :  { %v250_v49 = vrot.slane %v246_v39, 1  ;;  %v284_v60 = vmax.f32 %v246_v39, 0.0 }
   0xf   :  { %v72_v37 = vmin.f32 %v63_v32, %v70_v33  ;;  %v76_v38 = vmax.f32 %v62_v31, %v74_v34  ;;  %v66_v40 = vrot.slane %v64_v36, 1  ;;  %v91_v46 = vmax.f32 %v63_v32, %v70_v33 }
  0x10   :  { %v92_v47 = vmin.f32 %v62_v31, %v74_v34  ;;  %v247_v50 = vsub.f32 %v520_v42, %v522_v43  ;;  %v526_v57 = vmul.f32 %v250_v49, %v246_v39  ;;  %v36_v39 = vsub.f32 %v510_v26, %v34_v29 }
  0x11   :  { %v77_v41 = vsub.f32 %v72_v37, %v76_v38  ;;  %v68_v44 = vmul.f32 %v66_v40, %v64_v36 }
  0x12   :  { %v93_v53 = vsub.f32 %v91_v46, %v92_v47  ;;  %v251_v54 = vrot.slane %v247_v50, 1  ;;  %v285_v61 = vmax.f32 %v247_v50, 0.0  ;;  %v294_v63 = vadd.f32 %v526_v57, %v526_v57 }
  0x13   :  { %v78_v45 = vmax.f32 %v77_v41, 0.0  ;;  %v84_v52 = vrot.slane %v68_v44, 4  ;;  %v37_v47 = vand.u32 2147483647, %v36_v39 }
  0x14   :  { %v95_v58 = vrot.slane %v93_v53, 1  ;;  %v531_v3 = vmul.f32 %v251_v54, %v247_v50  ;;  %v289_v7 = vrot.slane %v285_v61, 1 }
  0x15   :  { %v80_v51 = vrot.slane %v78_v45, 1  ;;  %v86_v56 = vadd.f32 %v84_v52, %v68_v44 }
  0x16   :  { %v295_v8 = vadd.f32 %v531_v3, %v531_v3 }
  0x17   :  { %v82_v55 = vmul.f32 %v80_v51, %v78_v45 }
  0x19   :  { %v87_v59 = vsub.f32 %v86_v56, %v82_v55 }
  0x1b   :  { %v88_v4 = vmax.f32 %v87_v59, 1e-07 }
  0x1d   :  { %401 = vrcp.f32 %v88_v4 }
  0x2a   :  { %v402_v31 = vpop.eup %401 }
  0x2b   :  { %v90_v40 = vmul.f32 %v402_v31, %v82_v55 }
  0x78   :  { %v127_v9 = vpop.permute.xlu0 %126 }
  0x79   :  { %v132_v11 = vsub.f32 %v118_v0, %v127_v9  ;;  %v134_v12 = vadd.f32 %v127_v9, %v118_v0  ;;  %v97_v0 = vmul.f32 %v95_v58, %v93_v53 }
  0x7b   :  { %v488_v13 = vsub.f32 %v134_v12, %v132_v11  ;;  %v98_v6 = vmax.f32 %v97_v0, 1e-07 }
  0x7c   :  { %v129_v15 = vpop.permute.xlu0 %128 }
  0x7d   :  { %v133_v17 = vsub.f32 %v119_v1, %v129_v15  ;;  %v135_v18 = vadd.f32 %v129_v15, %v119_v1  ;;  %238 = vrot.lane.b32.xlu1 %v488_v13, %s429_s5  ;;  %403 = vrcp.f32 %v98_v6  ;;  %v99_v30 = vsub.f32 %v98_v6, %v87_v59 }
  0x7f   :  { %v498_v21 = vsub.f32 %v135_v18, %v133_v17 }
  0x81   :  { %170 = vperm.xlu1 %396, %v132_v11   ;;  %240 = vrot.lane.b32.xlu0 %v498_v21, %s429_s5 }
  0x85   :  { %397 = vset.pattern.permute.xlu1 %v430_v25  ;;  %150 = vperm.xlu0 %395, %v134_v12  }
  0x86   :  { %193 = vperm.xlu1 %397, %v134_v12  }
  0x89   :  { %155 = vperm.xlu0 %395, %v135_v18  }
  0x8a   :  { %211 = vperm.xlu1 %397, %v132_v11   ;;  %v293_v11 = vmul.f32 %v289_v7, %v285_v61  ;;  %v404_v33 = vpop.eup %403  ;;  %v207_v7 = vrot.slane %v520_v42, %v496_v20 }
  0x8b   :  { %v101_v41 = vmul.f32 %v404_v33, %v99_v30 }
  0x8c   :  { %v297_v15 = vsub.f32 %v295_v8, %v293_v11 }
  0x8d   :  { %175 = vperm.xlu0 %395, %v133_v17   ;;  %v342_v48 = vpop.xlane.xlu1 %341  ;;  %v102_v51 = vsub.f32 %v90_v40, %v101_v41 }
  0x8e   :  { %215 = vperm.xlu1 %397, %v133_v17   ;;  %v299_v17 = vmax.f32 %v297_v15, 1e-07  ;;  %v551_v32 = vsub.f32 %v481_v2, %v342_v48 }
  0x8f   :  { %v103_v56 = vsub.f32 1.0, %v102_v51 }
  0x90   :  { %v344_v44 = vmul.f32 1.442695, %v551_v32 }
  0x91   :  { %398 = vset.pattern.permute.xlu0 %v430_v25 }
  0x92   :  { %197 = vperm.xlu0 %398, %v135_v18   ;;  %400 = vset.pattern.permute.xlu1 %v427_v5  ;;  %v537_v18 = vsub.s32 0, %v490_v16  ;;  %v31_v16 = vstv %s583_s0 }
  0x94   :  { %v181_v27 = vrot.slane %v503_v23, %v537_v18  ;;  %v161_v28 = vrot.slane %v493_v19, %v537_v18  ;;  %v273_v30 = vrot.slane %v531_v3, %v537_v18 }
  0x96   :  { %399 = vset.pattern.permute.xlu0 %v427_v5  ;;  %v288_v5 = vrot.slane %v284_v60, 1 }
  0x98   :  { %v292_v9 = vmul.f32 %v288_v5, %v284_v60 }
  0x9a   :  { %v296_v14 = vsub.f32 %v294_v63, %v292_v9 }
  0xef   :  { %v239_v62 = vpop.permute.xlu1 %238 }
  0xf0   :  { %v244_v1 = vmul.f32 %v239_v62, %v488_v13  ;;  %v298_v13 = vmax.f32 %v296_v14, 1e-07 }
  0xf2   :  { %258 = vperm.xlu0 %399, %v244_v1   ;;  %405 = vrcp.f32 %v298_v13 }
  0xf3   :  { %v241_v10 = vpop.permute.xlu0 %240  ;;  %407 = vrcp.f32 %v299_v17 }
  0xf4   :  { %v245_v12 = vmul.f32 %v241_v10, %v498_v21  ;;  %v30_v21 = vld [vmem:[%s585_s2] sm:$0x1]  ;;  %409 = vpow2.f32 %v344_v44  ;;  %v225_v10 = vrot.slane %v522_v43, %v496_v20 }
  0xf5   :  { %v32_v38 = vmul.f32 %v31_v16, %v30_v21 }
  0xf6   :  { %263 = vperm.xlu1 %400, %v245_v12   ;;  %v165_v12 = vrot.slane %v520_v42, %v537_v18 }
  0xf7   :  { %v42_v49 = vrot.slane %v32_v38, %v537_v18  ;;  %v104_v62 = vmul.f32 %v103_v56, %v32_v38 }
  0xf9   :  { %v44_v54 = vmul.f32 %v42_v49, %v37_v47  ;;  %v106_v23 = vsel %vm105_vm2, %v104_v62, 0.0 }
  0xfb   :  { %v46_v61 = vsel %vm45_vm1, %v44_v54, 0.0 }
  0xfc   :  { %v171_v25 = vpop.permute.xlu1 %170 }
  0xfd   :  { %v186_v35 = vmax.f32 %v171_v25, %v181_v27  ;;  %v269_v27 = vrot.slane %v526_v57, %v537_v18 }
  0xff   :  { %v406_v50 = vpop.eup %405 }
 0x100   :  { %v151_v34 = vpop.permute.xlu0 %150  ;;  %v408_v26 = vpop.eup %407  ;;  %v302_v58 = vmul.f32 %v406_v50, %v292_v9  ;;  %v185_v9 = vrot.slane %v522_v43, %v537_v18 }
 0x101   :  { %v166_v36 = vmin.f32 %v151_v34, %v161_v28  ;;  %v194_v37 = vpop.permute.xlu1 %193  ;;  %v303_v59 = vmul.f32 %v408_v26, %v293_v11  ;;  %v410_v0 = vpop.eup %409 }
 0x102   :  { %v208_v2 = vmin.f32 %v194_v37, %v203_v22  ;;  %v319_v19 = vmul.f32 0.008928572, %v302_v58  ;;  %v346_v4 = vsel %vm339_vm0, %v410_v0, 0.0 }
 0x103   :  { %v188_v45 = vsub.f32 %v166_v36, %v186_v35  ;;  %v320_v22 = vmul.f32 0.008928572, %v303_v59  ;;  %v338_v59 = vld [vmem:[%s589_s6] sm:$0x3] }
 0x104   :  { %v156_v5 = vpop.permute.xlu0 %155 }
 0x105   :  { %v212_v46 = vpop.permute.xlu1 %211  ;;  %v190_v53 = vmax.f32 %v188_v45, 0.0  ;;  %v323_v63 = vsel %vm321_vm3, %v320_v22, 0.0  ;;  %v167_v17 = vmin.f32 %v156_v5, %v165_v12 }
 0x106   :  { %v226_v48 = vmax.f32 %v212_v46, %v221_v24  ;;  %v322_v24 = vsel %vm321_vm3, %v319_v19, 0.0 }
 0x107   :  { %v324_v1 = vadd.f32 %v323_v63, %v322_v24 }
 0x108   :  { %v228_v52 = vsub.f32 %v208_v2, %v226_v48  ;;  %v176_v6 = vpop.permute.xlu0 %175 }
 0x109   :  { %v216_v11 = vpop.permute.xlu1 %215  ;;  %v187_v15 = vmax.f32 %v176_v6, %v185_v9 }
 0x10a   :  { %v230_v55 = vmax.f32 %v228_v52, 0.0  ;;  %v227_v13 = vmax.f32 %v216_v11, %v225_v10 }
 0x10b   :  { %v189_v28 = vsub.f32 %v167_v17, %v187_v15 }
 0x10c   :  { %v232_v60 = vmul.f32 %v230_v55, %v190_v53 }
 0x10d   :  { %v198_v8 = vpop.permute.xlu0 %197  ;;  %v191_v20 = vmax.f32 %v189_v28, 0.0 }
 0x10e   :  { %v209_v14 = vmin.f32 %v198_v8, %v207_v7 }
 0x110   :  { %v229_v25 = vsub.f32 %v209_v14, %v227_v13 }
 0x111   :  { %47 = vadd.xlane.f32.xlu0 %v46_v61 }
 0x112   :  { %v231_v21 = vmax.f32 %v229_v25, 0.0 }
 0x114   :  { %v233_v42 = vmul.f32 %v231_v21, %v191_v20 }
 0x115   :  { %107 = vadd.xlane.f32.xlu0 %v106_v23 }
 0x119   :  { %325 = vadd.xlane.f32.xlu0 %v324_v1 }
 0x11a   :  { %347 = vadd.xlane.f32.xlu1 %v346_v4 }
 0x16d   :  { %v259_v29 = vpop.permute.xlu0 %258 }
 0x16e   :  { %v274_v16 = vadd.f32 %v269_v27, %v259_v29 }
 0x170   :  { %v276_v43 = vsub.f32 %v274_v16, %v232_v60 }
 0x171   :  { %v264_v31 = vpop.permute.xlu1 %263 }
 0x172   :  { %v278_v33 = vmax.f32 %v276_v43, 1e-07  ;;  %v275_v34 = vadd.f32 %v273_v30, %v264_v31 }
 0x174   :  { %411 = vrcp.f32 %v278_v33  ;;  %v277_v35 = vsub.f32 %v275_v34, %v233_v42 }
 0x176   :  { %v279_v36 = vmax.f32 %v277_v35, 1e-07 }
 0x178   :  { %413 = vrcp.f32 %v279_v36 }
 0x181   :  { %v412_v37 = vpop.eup %411 }
 0x182   :  { %v282_v38 = vmul.f32 %v412_v37, %v232_v60  ;;  %v351_v60 = vsub.f32 0.0, %v338_v59 }
 0x184   :  { %v304_v40 = vmul.f32 0.008928572, %v282_v38  ;;  %v352_v19 = vmul.f32 0.5, %v351_v60 }
 0x185   :  { %v414_v57 = vpop.eup %413 }
 0x186   :  { %v283_v39 = vmul.f32 %v414_v57, %v233_v42  ;;  %v307_v44 = vsel %vm306_vm4, %v304_v40, 0.0 }
 0x188   :  { %v305_v41 = vmul.f32 0.008928572, %v283_v39 }
 0x18a   :  { %v308_v45 = vsel %vm306_vm4, %v305_v41, 0.0 }
 0x18b   :  { %v309_v3 = vadd.f32 %v308_v45, %v307_v44 }
 0x18d   :  { %310 = vadd.xlane.f32.xlu1 %v309_v3 }
 0x19a   :  { %v48_v18 = vpop.xlane.xlu0 %47 }
 0x19b   :  { %v49_v46 = vrot.slane %v48_v18, 4 }
 0x19d   :  { %v50_v47 = vadd.f32 %v49_v46, %v48_v18 }
 0x19e   :  { %v108_v49 = vpop.xlane.xlu0 %107 }
 0x19f   :  { %v51_v50 = vrot.slane %v50_v47, 2  ;;  %v109_v2 = vrot.slane %v108_v49, 4 }
 0x1a1   :  { %v110_v48 = vadd.f32 %v109_v2, %v108_v49  ;;  %v52_v51 = vadd.f32 %v51_v50, %v50_v47 }
 0x1a2   :  { %v326_v63 = vpop.xlane.xlu0 %325 }
 0x1a3   :  { %v348_v26 = vpop.xlane.xlu1 %347  ;;  %v111_v52 = vrot.slane %v110_v48, 2  ;;  %v53_v53 = vrot.slane %v52_v51, 1  ;;  %v327_v0 = vrot.slane %v326_v63, 4 }
 0x1a4   :  { %415 = vlog2.f32 %v348_v26 }
 0x1a5   :  { %v54_v54 = vadd.f32 %v53_v53, %v52_v51  ;;  %v112_v55 = vadd.f32 %v111_v52, %v110_v48  ;;  %v328_v1 = vadd.f32 %v327_v0, %v326_v63 }
 0x1a7   :  { %380 = vpush %v54_v54  ;;  %v113_v56 = vrot.slane %v112_v55, 1  ;;  %v329_v4 = vrot.slane %v328_v1, 2 }
 0x1a9   :  { %v114_v58 = vadd.f32 %v113_v56, %v112_v55  ;;  %v330_v7 = vadd.f32 %v329_v4, %v328_v1 }
 0x1ab   :  { %382 = vpush %v114_v58  ;;  %v331_v10 = vrot.slane %v330_v7, 1 }
 0x1ad   :  { %v332_v12 = vadd.f32 %v331_v10, %v330_v7 }
 0x1b1   :  { %v416_v61 = vpop.eup %415 }
 0x1b2   :  { %v350_v62 = vmul.f32 0.6931472, %v416_v61 }
 0x1b4   :  { %v353_v22 = vsub.f32 %v551_v32, %v350_v62 }
 0x1b6   :  { %v354_v23 = vmul.f32 %v353_v22, %v352_v19 }
 0x1b8   :  { %v355_v24 = vsel %vm339_vm0, %v354_v23, 0.0 }
 0x1b9   :  { %356 = vadd.xlane.f32.xlu1 %v355_v24 }
 0x1d8   :  { %s381_s15 = spop %380 }
 0x1d9   :  { %57 = sst [smem:[#allocation3]] %s381_s15 }
 0x1dc   :  { %s383_s16 = spop %382 }
 0x1dd   :  { %117 = sst [smem:[#allocation3 + $0x1]] %s383_s16 }
 0x216   :  { %v311_v5 = vpop.xlane.xlu1 %310 }
 0x217   :  { %v312_v6 = vrot.slane %v311_v5, 4 }
 0x219   :  { %v313_v8 = vadd.f32 %v312_v6, %v311_v5 }
 0x21b   :  { %v314_v9 = vrot.slane %v313_v8, 2 }
 0x21d   :  { %v315_v11 = vadd.f32 %v314_v9, %v313_v8 }
 0x21f   :  { %v316_v32 = vrot.slane %v315_v11, 1 }
 0x221   :  { %v317_v14 = vadd.f32 %v316_v32, %v315_v11 }
 0x223   :  { %384 = vpush %v317_v14 }
 0x224   :  { %386 = vpush %v332_v12 }
 0x242   :  { %v357_v15 = vpop.xlane.xlu1 %356 }
 0x243   :  { %v358_v13 = vrot.slane %v357_v15, 4 }
 0x245   :  { %v359_v17 = vadd.f32 %v358_v13, %v357_v15 }
 0x247   :  { %v360_v25 = vrot.slane %v359_v17, 2 }
 0x249   :  { %v361_v27 = vadd.f32 %v360_v25, %v359_v17 }
 0x24b   :  { %v362_v28 = vrot.slane %v361_v27, 1 }
 0x24d   :  { %v363_v29 = vadd.f32 %v362_v28, %v361_v27 }
 0x24f   :  { %388 = vpush %v363_v29 }
 0x254   :  { %s385_s6 = spop %384 }
 0x255   :  { %s387_s17 = spop %386 }
 0x256   :  { %s334_s18 = ssub.f32 %s385_s6, %s387_s17 }
 0x258   :  { %336 = sst [smem:[#allocation3 + $0x2]] %s334_s18 }
 0x280   :  { %s389_s19 = spop %388 }
 0x281   :  { %366 = sst [smem:[#allocation3 + $0x3]] %s389_s19 }
 0x282   :  { %374 = dma.smem_to_hbm %s431_s20, 16, %s590_s7, [#allocation4]  }
 0x283   :  { %425 = dma.done.wait [#allocation4], 16  }
 0x284   :  { %426 = vsyncadd [#allocation4], 4294967280 }
 0x285   :  { %378 = sfence }
 0x286   :  { %379 = vsyncpa [#allocation4], 1 }

</bundles_post_ra>
